<compile_context>
chip_gen: v7x
topology: tpu7x:2x2x1
jax: 0.10.0
libtpu: 0.0.40
codegen_flags: <defaults>
</compile_context>

<pallas_src>
import functools
import math

import jax
import jax.numpy as jnp
from jax.experimental import pallas as pl
from jax.experimental.pallas import tpu as pltpu


def _round_up(x: int, m: int) -> int:
    return ((x + m - 1) // m) * m


def _tensorcores_per_device() -> int:
    """Best-effort TC count (v7x has 2); falls back to 1."""
    try:
        info = pltpu.get_tpu_info()
        for attr in ("num_cores", "tensorcore_count", "cores_per_chip"):
            v = getattr(info, attr, None)
            if isinstance(v, int) and v > 0:
                return v
    except Exception:
        pass
    try:
        v = getattr(jax.devices()[0], "num_cores", None)
        if isinstance(v, int) and v > 0:
            return v
    except Exception:
        pass
    return 1


def _choose_tile_n(n: int, num_cores: int) -> int:
    """Row tile: big enough to amortise per-step overhead, sized to N so the
    last tile is not mostly padding, and >= num_cores steps on multi-TC chips."""
    n8 = _round_up(max(n, 1), 8)
    max_tile = 1024
    n_steps = pl.cdiv(n8, max_tile)                      # size-driven step count
    if num_cores > 1 and n8 >= 512:
        n_steps = max(n_steps, num_cores)                # keep both TCs busy (v7x)
    tile = _round_up(pl.cdiv(n8, n_steps), 8)
    return tile


def _token_embedding_kernel(tok_ref, table_ref, out_ref, *, scale):
    # tok_ref:   (TN, 1)       int32    -- tile of token ids
    # table_ref: (V_pad, D_pad) float32 -- full (zero-padded) table, VMEM resident
    # out_ref:   (TN, D_pad)   out dtype
    tokens = tok_ref[...]                                     # (TN, 1)
    tn = tokens.shape[0]
    v_pad = table_ref.shape[0]                                # lane-dense (mult of 128)
    vocab_ids = jax.lax.broadcasted_iota(jnp.int32, (tn, v_pad), 1)
    # Fold sqrt(D) into the one-hot: the scale rides through the MXU for free
    # instead of costing an extra (TN, D_pad) VPU pass after the matmul.
    onehot = jnp.where(tokens == vocab_ids,
                       jnp.float32(scale),
                       jnp.float32(0.0)).astype(table_ref.dtype)
    out_ref[...] = jnp.dot(onehot, table_ref[...],
                           preferred_element_type=jnp.float32
                           ).astype(out_ref.dtype)


def token_embedding(tokens, table, *, tile_n=None, out_dtype=jnp.float32):
    """tokens: (B, S) int, table: (V, D) float32 -> (B, S, D) out_dtype.

    out_dtype=jnp.bfloat16 halves the (roofline-dominant) output store bytes but
    deviates from PyTorch's float32 output; default keeps float32.
    """
    B, S = tokens.shape
    V, D = table.shape
    N = B * S
    scale = math.sqrt(D)              # PyTorch uses sqrt(embed_dim) (unpadded D)

    num_cores = _tensorcores_per_device()
    if tile_n is None:
        tile_n = _choose_tile_n(N, num_cores)
    tile_n = _round_up(tile_n, 8)
    n_steps = pl.cdiv(max(N, 1), tile_n)
    N_pad = n_steps * tile_n

    # Lane-dense padding: vocab rows to 128 (clean one-hot lanes / MXU K, zero
    # rows keep OOB-id -> zero-row semantics) and embedding cols to 128
    # (unmasked, full-lane output stores). Pads sliced off afterwards.
    V_pad = _round_up(V, 128)
    D_pad = _round_up(D, 128)
    if (V_pad, D_pad) != (V, D):
        table_in = jnp.pad(table, ((0, V_pad - V), (0, D_pad - D)))
    else:
        table_in = table

    # Flatten + pad token ids (pad id 0 is in-range; padded rows are dropped).
    tok_flat = tokens.reshape(-1).astype(jnp.int32)
    if N_pad != N:
        tok_flat = jnp.pad(tok_flat, (0, N_pad - N))
    tok_flat = tok_flat.reshape(N_pad, 1)

    out_bytes = jnp.dtype(out_dtype).itemsize
    # Explicit VMEM budget (v5e default scoped limit is only 16 MiB): double-
    # buffered output + table + token tiles, plus the in-kernel one-hot temp.
    vmem_need = (2 * tile_n * D_pad * out_bytes       # output (double-buffered)
                 + 2 * V_pad * D_pad * 4              # table
                 + 2 * tile_n * 4                     # token ids
                 + tile_n * V_pad * 4)                # one-hot temp
    vmem_limit = min(_round_up(2 * vmem_need + (4 << 20), 1 << 20), 64 << 20)

    kernel = functools.partial(_token_embedding_kernel, scale=scale)

    out_flat = pl.pallas_call(
        kernel,
        out_shape=jax.ShapeDtypeStruct((N_pad, D_pad), out_dtype),
        grid_spec=pltpu.PrefetchScalarGridSpec(
            num_scalar_prefetch=0,
            grid=(N_pad // tile_n,),
            in_specs=[
                # Token ids: tiny (tile_n, 1) tile (DMA is <0.1% of output bytes).
                pl.BlockSpec((tile_n, 1), lambda i: (i, 0)),
                # Full (padded) embedding table, same block every step.
                pl.BlockSpec((V_pad, D_pad), lambda i: (0, 0)),
            ],
            out_specs=pl.BlockSpec((tile_n, D_pad), lambda i: (i, 0)),
        ),
        compiler_params=pltpu.CompilerParams(
            dimension_semantics=("parallel",),
            vmem_limit_bytes=vmem_limit),
    )(tok_flat, table_in)

    return out_flat[:N, :D].reshape(B, S, D)


if __name__ == "__main__":
    # Small deterministic setup consistent with TokenEmbedding(charset, D).
    charset_size = 97      # PARSeq-like charset (~95 chars + special tokens)
    embed_dim = 128        # small, lane-aligned embedding dim
    B, S = 2, 8

    key = jax.random.PRNGKey(0)
    k_w, k_t = jax.random.split(key)
    # nn.Embedding default init: N(0, 1)
    embedding_weight = jax.random.normal(
        k_w, (charset_size, embed_dim), dtype=jnp.float32)
    tokens = jax.random.randint(
        k_t, (B, S), minval=0, maxval=charset_size, dtype=jnp.int32)

    out = token_embedding(tokens, embedding_weight)
    out = jax.block_until_ready(out)

    # Reference check (plain JAX gather + scale).
    ref = math.sqrt(embed_dim) * embedding_weight[tokens]
    assert out.shape == (B, S, embed_dim)
    err = float(jnp.max(jnp.abs(out - ref)))
    assert jnp.allclose(out, ref, atol=1e-4, rtol=1e-4), f"max abs err {err}"

    # Exercise the multi-step / padded-N path too (tile smaller than N).
    out2 = token_embedding(tokens, embedding_weight, tile_n=8)
    out2 = jax.block_until_ready(out2)
    assert jnp.allclose(out2, ref, atol=1e-4, rtol=1e-4)

    print("KERNEL_OK")
</pallas_src>

<mosaic_0001>
module attributes {stable_mosaic.version = 11 : i64} {
  func.func @_token_embedding_kernel(%arg0: i32, %arg1: memref<16x1xi32, #tpu.memory_space<vmem>>, %arg2: memref<128x128xf32, #tpu.memory_space<vmem>>, %arg3: memref<16x128xf32, #tpu.memory_space<vmem>>) attributes {dimension_semantics = [#tpu.dimension_semantics<parallel>], iteration_bounds = array<i64: 1>, scalar_prefetch = 0 : i64, scratch_operands = 0 : i64, tpu.core_type = #tpu.core_type<tc>, window_params = [{transform_indices = @transform_0, window_bounds = array<i64: 16, 1>}, {pipeline_mode = #tpu.pipeline_mode<synchronous>, transform_indices = @transform_1, window_bounds = array<i64: 128, 128>}, {transform_indices = @transform_2, window_bounds = array<i64: 16, 128>}]} {
    %c0 = arith.constant 0 : index
    %c0_0 = arith.constant 0 : index
    %0 = vector.load %arg1[%c0, %c0_0] : memref<16x1xi32, #tpu.memory_space<vmem>>, vector<16x1xi32>
    %1 = tpu.iota {dimensions = array<i32: 1>} : vector<16x128xi32>
    %2 = vector.broadcast %0 : vector<16x1xi32> to vector<16x128xi32>
    %3 = arith.cmpi eq, %2, %1 : vector<16x128xi32>
    %cst = arith.constant 11.3137083 : f32
    %cst_1 = arith.constant 0.000000e+00 : f32
    %4 = vector.broadcast %cst : f32 to vector<16x128xf32>
    %5 = vector.broadcast %cst_1 : f32 to vector<16x128xf32>
    %6 = arith.select %3, %4, %5 : vector<16x128xi1>, vector<16x128xf32>
    %c0_2 = arith.constant 0 : index
    %c0_3 = arith.constant 0 : index
    %7 = vector.load %arg2[%c0_2, %c0_3] : memref<128x128xf32, #tpu.memory_space<vmem>>, vector<128x128xf32>
    %cst_4 = arith.constant dense<0.000000e+00> : vector<16x128xf32>
    %8 = tpu.matmul %6, %7, %cst_4 {dimension_numbers = #tpu.dot_dimension_numbers<[1], [0], [0], [1], [0, 0, 1, 1], [], []>} : vector<16x128xf32>, vector<128x128xf32>, vector<16x128xf32> -> vector<16x128xf32>
    %c0_5 = arith.constant 0 : index
    %c0_6 = arith.constant 0 : index
    %9 = vector.load %arg3[%c0_5, %c0_6] : memref<16x128xf32, #tpu.memory_space<vmem>>, vector<16x128xf32>
    tpu.vector_store %arg3[%c0_5, %c0_6], %8 {strides = array<i32>} : memref<16x128xf32, #tpu.memory_space<vmem>>, vector<16x128xf32>,
    return
  }
  func.func @transform_0(%arg0: i32) -> (i32, i32) {
    %c0_i32 = arith.constant 0 : i32
    %c0_i32_0 = arith.constant 0 : i32
    return %arg0, %c0_i32 : i32, i32
  }
  func.func @transform_1(%arg0: i32) -> (i32, i32) {
    %c0_i32 = arith.constant 0 : i32
    %c0_i32_0 = arith.constant 0 : i32
    %c0_i32_1 = arith.constant 0 : i32
    return %c0_i32, %c0_i32_0 : i32, i32
  }
  func.func @transform_2(%arg0: i32) -> (i32, i32) {
    %c0_i32 = arith.constant 0 : i32
    %c0_i32_0 = arith.constant 0 : i32
    return %arg0, %c0_i32 : i32, i32
  }
}

</mosaic_0001>

<bundles_post_ra>
// kernel: tpu_custom_call.1
= control target key start
LH: loop header
LB: loop body
LE: loop exit
PB: predicated region body
PF: predicated region fallthrough
CT: control target
= control target key end

     0   :  { %7 = vsyncpa [#allocation3], 0  ;;  %s349_s0 = inlined_call_operand.vmem [shape: s32[16,1], index: 0, kind: input, shape index: {}]   ;;  %s350_s1 = inlined_call_operand.hbm [shape: f32[128,128], index: 1, kind: input, shape index: {}]   ;;  %s351_s2 = inlined_call_operand.hbm [shape: f32[16,128], index: 2, kind: output, shape index: {}]  }
   0x1   :  { %8 = vsyncpa [#allocation4], 0  ;;  %s292_s9 = smov [#allocation2]   ;;  %s244_s13 = scalar_lea.hbm %s350_s1, 2048 }
   0x2   :  { %s16_s10 = sshll.u32 %s292_s9, 4  ;;  %p245_p0 = scmp.ne.s32.totalorder %s350_s1, %s244_s13  ;;  %s17_s10 = int_to_ptr.vmem [resolvable:$true] %s16_s10 }
   0x3   :  { %p248_p1 = scmp.lt.u32.totalorder %s244_s13, %s350_s1 }
   0x5   :  { %p250_p2 = pnand %p248_p1, %p245_p0 }
   0x7   :  { %253 = shalt.err (!%p250_p2)
}
   0x8   :  { %s254_s18 = scalar_lea.vmem %s17_s10, 2048  ;;  %p259_p4 = scmp.lt.s32.totalorder %s17_s10, %s17_s10 }
   0x9   :  { %p255_p3 = scmp.ne.s32.totalorder %s17_s10, %s254_s18  ;;  %p260_p5 = scmp.lt.s32.totalorder %s254_s18, %s254_s18 }
   0xb   :  { %p261_p6 = por %p260_p5, %p259_p4 }
   0xd   :  { %p262_p7 = pnand %p261_p6, %p255_p3 }
   0xf   :  { %265 = shalt.err (!%p262_p7)
}
  0x10   :  { %s293_s19 = smov 128   ;;  %s294_s20 = smov 8  }
  0x11   :  { %22 = dma.hbm_to_vmem [thread:$0]  %s350_s1, 2048, %s17_s10, [#allocation3], %s293_s19, %s293_s19, %s294_s20  }
  0x12   :  { %288 = dma.done.wait [#allocation3], 2048  }
  0x13   :  { %289 = vsyncadd [#allocation3], 4294965248  ;;  %v295_v0 = vmov 0   ;;  %v26_v1 = vld [vmem:[%s349_s0] sm:$0xff]  ;;  %v41_v3 = vld [vmem:[#allocation2 + $0x8] sm:$0xff]  ;;  %v28_v27 = vlaneseq }
  0x14   :  { %243 = vset.pattern.permute.xlu0 %v295_v0  ;;  %v40_v2 = vld [vmem:[#allocation2] sm:$0xff]  ;;  %v42_v4 = vld [vmem:[#allocation2 + $0x10] sm:$0xff]  ;;  %v43_v5 = vld [vmem:[#allocation2 + $0x18] sm:$0xff]  ;;  %v296_v30 = vmov 11.313708  }
  0x15   :  { %31 = vperm.xlu0 %243, %v26_v1   ;;  %v27_v6 = vld [vmem:[%s349_s0 + $0x8] sm:$0xff]  ;;  %v205_v7 = vpack.c.bf16 %v41_v3, %v40_v2  ;;  %v209_v8 = vpack.c.bf16 %v43_v5, %v42_v4  ;;  %v44_v9 = vld [vmem:[#allocation2 + $0x20] sm:$0xff]  ;;  %v46_v12 = vld [vmem:[#allocation2 + $0x30] sm:$0xff]  ;;  %v29_v28 = vand.u32 127, %v28_v27  ;;  %s297_s0 = smov [#allocation5]  }
  0x16   :  { %v45_v10 = vld [vmem:[#allocation2 + $0x28] sm:$0xff]  ;;  %v47_v13 = vld [vmem:[#allocation2 + $0x38] sm:$0xff]  ;;  %v48_v15 = vld [vmem:[#allocation2 + $0x40] sm:$0xff]  ;;  %s138_s1 = sshll.u32 %s297_s0, 4  ;;  %s139_s1 = int_to_ptr.vmem [resolvable:$true] %s138_s1 }
  0x17   :  { %206 = vmatprep.subr.bf16.mxu0 %v205_v7  ;;  %v213_v11 = vpack.c.bf16 %v45_v10, %v44_v9  ;;  %v217_v14 = vpack.c.bf16 %v47_v13, %v46_v12  ;;  %v49_v16 = vld [vmem:[#allocation2 + $0x48] sm:$0xff]  ;;  %v50_v18 = vld [vmem:[#allocation2 + $0x50] sm:$0xff]  ;;  %v51_v19 = vld [vmem:[#allocation2 + $0x58] sm:$0xff]  ;;  %s266_s27 = scalar_lea.vmem %s139_s1, 256  ;;  %p271_p9 = scmp.lt.s32.totalorder %s139_s1, %s139_s1 }
  0x18   :  { %208 = vmatpush3.bf16.msra.mxu0 %v205_v7  ;;  %v221_v17 = vpack.c.bf16 %v49_v16, %v48_v15  ;;  %v225_v20 = vpack.c.bf16 %v51_v19, %v50_v18  ;;  %v52_v21 = vld [vmem:[#allocation2 + $0x60] sm:$0xff]  ;;  %v53_v22 = vld [vmem:[#allocation2 + $0x68] sm:$0xff]  ;;  %v54_v24 = vld [vmem:[#allocation2 + $0x70] sm:$0xff]  ;;  %p267_p8 = scmp.ne.s32.totalorder %s139_s1, %s266_s27  ;;  %p272_p10 = scmp.lt.s32.totalorder %s266_s27, %s266_s27 }
  0x19   :  { %34 = vperm.xlu0 %243, %v27_v6   ;;  %210 = vmatprep.subr.bf16.mxu0 %v209_v8  ;;  %v229_v23 = vpack.c.bf16 %v53_v22, %v52_v21  ;;  %v55_v25 = vld [vmem:[#allocation2 + $0x78] sm:$0xff] }
  0x1a   :  { %v233_v26 = vpack.c.bf16 %v55_v25, %v54_v24  ;;  %p273_p11 = por %p272_p10, %p271_p9 }
  0x1c   :  { %212 = vmatpush3.bf16.msra.mxu0 %v209_v8  ;;  %p274_p12 = pnand %p273_p11, %p267_p8 }
  0x1d   :  { %214 = vmatprep.subr.bf16.mxu0 %v213_v11 }
  0x20   :  { %216 = vmatpush3.bf16.msra.mxu0 %v213_v11 }
  0x21   :  { %218 = vmatprep.subr.bf16.mxu0 %v217_v14 }
  0x24   :  { %220 = vmatpush3.bf16.msra.mxu0 %v217_v14 }
  0x25   :  { %222 = vmatprep.subr.bf16.mxu0 %v221_v17 }
  0x28   :  { %224 = vmatpush3.bf16.msra.mxu0 %v221_v17 }
  0x29   :  { %226 = vmatprep.subr.bf16.mxu0 %v225_v20 }
  0x2c   :  { %228 = vmatpush3.bf16.msra.mxu0 %v225_v20 }
  0x2d   :  { %230 = vmatprep.subr.bf16.mxu0 %v229_v23 }
  0x30   :  { %232 = vmatpush3.bf16.msra.mxu0 %v229_v23 }
  0x31   :  { %234 = vmatprep.subr.bf16.mxu0 %v233_v26 }
  0x34   :  { %236 = vmatpush3.bf16.msra.mxu0 %v233_v26 }
  0x94   :  { %v32_v29 = vpop.permute.xlu0 %31 }
  0x95   :  { %vm36_vm0 = vcmp.eq.s32.totalorder %v32_v29, %v29_v28 }
  0x96   :  { %202 = vmatprep.mubr.msk.f32.mxu0 %vm36_vm0, %v296_v30 }
  0x98   :  { %v35_v31 = vpop.permute.xlu0 %34 }
  0x99   :  { %vm37_vm1 = vcmp.eq.s32.totalorder %v35_v31, %v29_v28 }
  0x9a   :  { %203 = vmatmul.mubr.msk.f32.vlgmr.msra.gmra.mrb[0].mxu0 %vm37_vm1, %v296_v30 }
 0x16d   :  { %v204_v32 = vpop.f32.mrb[0].mxu0 }
 0x16e   :  { %132 = vst [vmem:[#allocation5 + $0x8] sm:$0xff] %v204_v32  ;;  %v122_v33 = vpop.f32.mrb[1].mxu0 }
 0x16f   :  { %131 = vst [vmem:[#allocation5] sm:$0xff] %v122_v33 }
 0x170   :  { %277 = shalt.err (!%p274_p12)
}
 0x171   :  { %s278_s30 = scalar_lea.hbm %s351_s2, 256 }
 0x172   :  { %p279_p13 = scmp.ne.s32.totalorder %s351_s2, %s278_s30  ;;  %p282_p0 = scmp.lt.u32.totalorder %s278_s30, %s351_s2 }
 0x174   :  { %p284_p1 = pnand %p282_p0, %p279_p13 }
 0x176   :  { %287 = shalt.err (!%p284_p1)
}
 0x177   :  { %144 = dma.vmem_to_hbm [thread:$0]  %s139_s1, 256, %s351_s2, [#allocation4], %s293_s19, %s293_s19, %s294_s20  }
 0x178   :  { %290 = dma.done.wait [#allocation4], 256  }
 0x179   :  { %291 = vsyncadd [#allocation4], 4294967040 }
 0x17a   :  { %148 = vsyncpa [#allocation3], 1 }
 0x17b   :  { %149 = vsyncpa [#allocation4], 1 }

</bundles_post_ra>
